<compile_context>
chip_gen: v7x
topology: tpu7x:2x2x1
jax: 0.10.0
libtpu: 0.0.40
codegen_flags: <defaults>
</compile_context>

<pallas_src>
import jax
import jax.numpy as jnp
from jax import lax
from jax.experimental import pallas as pl
from jax.experimental.pallas import tpu as pltpu

LANES = 128      # f32 lane width
SUBLANES = 8     # f32 sublane count
NEG_BIG = -1e30  # bias fill for padded output columns
MAX_TILE_B = 512


def dense_logsoftmax_kernel(x_ref, w_ref, b_ref, o_ref):
    # Linear: logits = x @ W^T + b.
    # w_ref holds the PyTorch-layout (padded) weight [D_out_p, D_in]; the
    # contraction over dim 1 of both operands is the transposed-RHS matmul the
    # MXU consumes natively.  x/W may be bf16; accumulation is f32.
    logits = lax.dot_general(
        x_ref[...], w_ref[...],
        dimension_numbers=(((1,), (1,)), ((), ())),
        preferred_element_type=jnp.float32,
    )
    logits = logits + b_ref[...]  # bias is f32; broadcasts over the batch tile

    # Numerically-stable log-softmax along the lane-dense last axis, in f32.
    # Padded columns carry logit ~ -1e30: never the max, exp() underflows to 0.
    m = jnp.max(logits, axis=-1, keepdims=True)
    shifted = logits - m
    lse = jnp.log(jnp.sum(jnp.exp(shifted), axis=-1, keepdims=True))
    o_ref[...] = (shifted - lse).astype(o_ref.dtype)


def dense_forward(x, weight, bias, *, use_bf16_matmul=True):
    """x: [B, D_in]; weight: PyTorch layout [D_out, D_in]; bias: [D_out]."""
    B, D_in = x.shape
    D_out = weight.shape[0]
    out_dtype = x.dtype

    # Lane-dense output width.
    D_out_p = pl.cdiv(D_out, LANES) * LANES

    # Divisor-aware batch tile: multiple of 8 sublanes, <= MAX_TILE_B, minimal
    # padding; force >= 2 grid steps when possible so both v7x TCs get work.
    n_tiles = pl.cdiv(B, MAX_TILE_B)
    if B > SUBLANES:
        n_tiles = max(n_tiles, 2)
    TILE_B = pl.cdiv(pl.cdiv(B, n_tiles), SUBLANES) * SUBLANES
    B_p = n_tiles * TILE_B

    # MXU input dtype (f32 accumulation / f32 log-softmax regardless).
    mxu_dtype = jnp.bfloat16 if use_bf16_matmul else x.dtype
    mxu_bytes = jnp.dtype(mxu_dtype).itemsize
    out_bytes = jnp.dtype(out_dtype).itemsize

    # Pad / cast parameters once (in a real model: done at param-init time).
    w_p = weight.astype(mxu_dtype)
    b_p = bias.astype(jnp.float32).reshape(1, D_out)
    if D_out_p != D_out:
        w_p = jnp.zeros((D_out_p, D_in), mxu_dtype).at[:D_out, :].set(
            weight.astype(mxu_dtype))
        b_p = jnp.full((1, D_out_p), NEG_BIG, dtype=jnp.float32).at[0, :D_out].set(
            bias.astype(jnp.float32))

    # Pad batch up to a multiple of TILE_B (padded rows are sliced off below).
    x_p = x.astype(mxu_dtype)
    if B_p != B:
        x_p = jnp.zeros((B_p, D_in), mxu_dtype).at[:B, :].set(x.astype(mxu_dtype))

    grid = (B_p // TILE_B,)

    # Explicit VMEM budget: worst-case footprint (W double-buffered in the
    # fallback path) + f32 logits intermediate + slack, capped for v7x.
    needed = (2 * TILE_B * D_in * mxu_bytes         # x tile, double-buffered
              + 2 * TILE_B * D_out_p * out_bytes    # out tile, double-buffered
              + 2 * D_out_p * D_in * mxu_bytes      # W (worst case 2 buffers)
              + 2 * D_out_p * 4                     # bias
              + TILE_B * D_out_p * 4)               # f32 logits intermediate
    vmem_limit = int(min(max(needed + (4 << 20), 32 << 20), 56 << 20))

    cost = pl.CostEstimate(
        flops=2 * B_p * D_in * D_out_p,
        transcendentals=B_p * D_out_p,           # one exp per (padded) logit
        bytes_accessed=(B_p * D_in * mxu_bytes + D_out_p * D_in * mxu_bytes
                        + D_out_p * 4 + B_p * D_out_p * out_bytes),
    )

    def run(single_buffer_consts):
        # W / bias are grid-invariant: single-buffer them to halve W's VMEM use.
        const_kw = (dict(pipeline_mode=pl.Buffered(1))
                    if single_buffer_consts else {})
        grid_spec = pltpu.PrefetchScalarGridSpec(
            num_scalar_prefetch=0,
            grid=grid,
            in_specs=[
                pl.BlockSpec((TILE_B, D_in), lambda i: (i, 0)),              # x tile
                pl.BlockSpec((D_out_p, D_in), lambda i: (0, 0), **const_kw), # W resident
                pl.BlockSpec((1, D_out_p), lambda i: (0, 0), **const_kw),    # bias resident
            ],
            out_specs=pl.BlockSpec((TILE_B, D_out_p), lambda i: (i, 0)),
        )
        return pl.pallas_call(
            dense_logsoftmax_kernel,
            out_shape=jax.ShapeDtypeStruct((B_p, D_out_p), out_dtype),
            grid_spec=grid_spec,
            compiler_params=pltpu.CompilerParams(
                dimension_semantics=("parallel",),   # shard batch grid over 2 TCs on v7x
                vmem_limit_bytes=vmem_limit,
            ),
            cost_estimate=cost,
        )(x_p, w_p, b_p)

    try:
        out = run(True)
    except Exception:
        # Fallback: default double-buffering if Buffered(1) is unsupported here.
        out = run(False)

    return out[:B, :D_out]


if __name__ == "__main__":
    # Module config (activation='softmax' -> LogSoftmax(dim=-1), the default).
    batch, input_dim, output_dim = 8, 32, 16

    key = jax.random.PRNGKey(0)
    kx, kw, kb = jax.random.split(key, 3)

    # Deterministic synthetic parameters (PyTorch Linear shapes / layout).
    x = jax.random.normal(kx, (batch, input_dim), dtype=jnp.float32)
    weight = jax.random.normal(kw, (output_dim, input_dim), dtype=jnp.float32) * 0.1
    bias = jax.random.normal(kb, (output_dim,), dtype=jnp.float32) * 0.1

    out = dense_forward(x, weight, bias)
    jax.block_until_ready(out)
    assert out.shape == (batch, output_dim)

    # Reference 1: exact module semantics in f32 (loose tol: kernel matmul is
    # bf16-input / f32-accumulated).
    ref_f32 = jax.nn.log_softmax(x @ weight.T + bias, axis=-1)
    assert jnp.allclose(out, ref_f32, atol=3e-2, rtol=3e-2)

    # Reference 2: same bf16-input / f32-accum math as the kernel (tight tol).
    logits_bf16 = lax.dot_general(
        x.astype(jnp.bfloat16), weight.astype(jnp.bfloat16),
        dimension_numbers=(((1,), (1,)), ((), ())),
        preferred_element_type=jnp.float32) + bias
    ref_bf16 = jax.nn.log_softmax(logits_bf16, axis=-1)
    assert jnp.allclose(out, ref_bf16, atol=1e-4, rtol=1e-4)

    print("KERNEL_OK")
</pallas_src>

<mosaic_0001>
module attributes {stable_mosaic.version = 11 : i64} {
  func.func @dense_logsoftmax_kernel(%arg0: i32, %arg1: memref<8x32xbf16, #tpu.memory_space<vmem>>, %arg2: memref<128x32xbf16, #tpu.memory_space<vmem>>, %arg3: memref<1x128xf32, #tpu.memory_space<vmem>>, %arg4: memref<8x128xf32, #tpu.memory_space<vmem>>) attributes {dimension_semantics = [#tpu.dimension_semantics<parallel>], iteration_bounds = array<i64: 1>, scalar_prefetch = 0 : i64, scratch_operands = 0 : i64, tpu.core_type = #tpu.core_type<tc>, window_params = [{transform_indices = @transform_0, window_bounds = array<i64: 8, 32>}, {pipeline_mode = #tpu.pipeline_mode<synchronous>, transform_indices = @transform_1, window_bounds = array<i64: 128, 32>}, {pipeline_mode = #tpu.pipeline_mode<synchronous>, transform_indices = @transform_2, window_bounds = array<i64: 1, 128>}, {transform_indices = @transform_3, window_bounds = array<i64: 8, 128>}]} {
    %c0 = arith.constant 0 : index
    %c0_0 = arith.constant 0 : index
    %0 = vector.load %arg1[%c0, %c0_0] : memref<8x32xbf16, #tpu.memory_space<vmem>>, vector<8x32xbf16>
    %c0_1 = arith.constant 0 : index
    %c0_2 = arith.constant 0 : index
    %1 = vector.load %arg2[%c0_1, %c0_2] : memref<128x32xbf16, #tpu.memory_space<vmem>>, vector<128x32xbf16>
    %cst = arith.constant dense<0.000000e+00> : vector<8x128xf32>
    %2 = tpu.matmul %0, %1, %cst {dimension_numbers = #tpu.dot_dimension_numbers<[1], [1], [0], [0], [0, 0, 1, 0], [], []>} : vector<8x32xbf16>, vector<128x32xbf16>, vector<8x128xf32> -> vector<8x128xf32>
    %c0_3 = arith.constant 0 : index
    %c0_4 = arith.constant 0 : index
    %3 = vector.load %arg3[%c0_3, %c0_4] : memref<1x128xf32, #tpu.memory_space<vmem>>, vector<1x128xf32>
    %4 = vector.broadcast %3 : vector<1x128xf32> to vector<8x128xf32>
    %5 = arith.addf %2, %4 : vector<8x128xf32>
    %cst_5 = arith.constant dense<0xFF800000> : vector<8xf32>
    %6 = vector.multi_reduction <maximumf>, %5, %cst_5 [1] : vector<8x128xf32> to vector<8xf32>
    %7 = vector.shape_cast %6 : vector<8xf32> to vector<8x1xf32>
    %8 = vector.broadcast %7 : vector<8x1xf32> to vector<8x128xf32>
    %9 = arith.subf %5, %8 : vector<8x128xf32>
    %10 = math.exp %9 : vector<8x128xf32>
    %cst_6 = arith.constant dense<0.000000e+00> : vector<8xf32>
    %11 = vector.multi_reduction <add>, %10, %cst_6 [1] : vector<8x128xf32> to vector<8xf32>
    %12 = vector.shape_cast %11 : vector<8xf32> to vector<8x1xf32>
    %13 = math.log %12 : vector<8x1xf32>
    %14 = vector.broadcast %13 : vector<8x1xf32> to vector<8x128xf32>
    %15 = arith.subf %9, %14 : vector<8x128xf32>
    %c0_7 = arith.constant 0 : index
    %c0_8 = arith.constant 0 : index
    %16 = vector.load %arg4[%c0_7, %c0_8] : memref<8x128xf32, #tpu.memory_space<vmem>>, vector<8x128xf32>
    tpu.vector_store %arg4[%c0_7, %c0_8], %15 {strides = array<i32>} : memref<8x128xf32, #tpu.memory_space<vmem>>, vector<8x128xf32>,
    return
  }
  func.func @transform_0(%arg0: i32) -> (i32, i32) {
    %c0_i32 = arith.constant 0 : i32
    %c0_i32_0 = arith.constant 0 : i32
    return %arg0, %c0_i32 : i32, i32
  }
  func.func @transform_1(%arg0: i32) -> (i32, i32) {
    %c0_i32 = arith.constant 0 : i32
    %c0_i32_0 = arith.constant 0 : i32
    %c0_i32_1 = arith.constant 0 : i32
    return %c0_i32, %c0_i32_0 : i32, i32
  }
  func.func @transform_2(%arg0: i32) -> (i32, i32) {
    %c0_i32 = arith.constant 0 : i32
    %c0_i32_0 = arith.constant 0 : i32
    %c0_i32_1 = arith.constant 0 : i32
    return %c0_i32, %c0_i32_0 : i32, i32
  }
  func.func @transform_3(%arg0: i32) -> (i32, i32) {
    %c0_i32 = arith.constant 0 : i32
    %c0_i32_0 = arith.constant 0 : i32
    return %arg0, %c0_i32 : i32, i32
  }
}

module attributes {stable_mosaic.version = 11 : i64} {
  func.func @dense_logsoftmax_kernel(%arg0: i32, %arg1: memref<8x32xbf16, #tpu.memory_space<vmem>>, %arg2: memref<128x32xbf16, #tpu.memory_space<vmem>>, %arg3: memref<1x128xf32, #tpu.memory_space<vmem>>, %arg4: memref<8x128xf32, #tpu.memory_space<vmem>>) attributes {dimension_semantics = [#tpu.dimension_semantics<parallel>], iteration_bounds = array<i64: 1>, scalar_prefetch = 0 : i64, scratch_operands = 0 : i64, tpu.core_type = #tpu.core_type<tc>, window_params = [{transform_indices = @transform_0, window_bounds = array<i64: 8, 32>}, {pipeline_mode = #tpu.pipeline_mode<synchronous>, transform_indices = @transform_1, window_bounds = array<i64: 128, 32>}, {pipeline_mode = #tpu.pipeline_mode<synchronous>, transform_indices = @transform_2, window_bounds = array<i64: 1, 128>}, {transform_indices = @transform_3, window_bounds = array<i64: 8, 128>}]} {
    %c0 = arith.constant 0 : index
    %c0_0 = arith.constant 0 : index
    %0 = vector.load %arg1[%c0, %c0_0] : memref<8x32xbf16, #tpu.memory_space<vmem>>, vector<8x32xbf16>
    %c0_1 = arith.constant 0 : index
    %c0_2 = arith.constant 0 : index
    %1 = vector.load %arg2[%c0_1, %c0_2] : memref<128x32xbf16, #tpu.memory_space<vmem>>, vector<128x32xbf16>
    %cst = arith.constant dense<0.000000e+00> : vector<8x128xf32>
    %2 = tpu.matmul %0, %1, %cst {dimension_numbers = #tpu.dot_dimension_numbers<[1], [1], [0], [0], [0, 0, 1, 0], [], []>} : vector<8x32xbf16>, vector<128x32xbf16>, vector<8x128xf32> -> vector<8x128xf32>
    %c0_3 = arith.constant 0 : index
    %c0_4 = arith.constant 0 : index
    %3 = vector.load %arg3[%c0_3, %c0_4] : memref<1x128xf32, #tpu.memory_space<vmem>>, vector<1x128xf32>
    %4 = vector.broadcast %3 : vector<1x128xf32> to vector<8x128xf32>
    %5 = arith.addf %2, %4 : vector<8x128xf32>
    %cst_5 = arith.constant dense<0xFF800000> : vector<8xf32>
    %6 = vector.multi_reduction <maximumf>, %5, %cst_5 [1] : vector<8x128xf32> to vector<8xf32>
    %7 = vector.shape_cast %6 : vector<8xf32> to vector<8x1xf32>
    %8 = vector.broadcast %7 : vector<8x1xf32> to vector<8x128xf32>
    %9 = arith.subf %5, %8 : vector<8x128xf32>
    %10 = math.exp %9 : vector<8x128xf32>
    %cst_6 = arith.constant dense<0.000000e+00> : vector<8xf32>
    %11 = vector.multi_reduction <add>, %10, %cst_6 [1] : vector<8x128xf32> to vector<8xf32>
    %12 = vector.shape_cast %11 : vector<8xf32> to vector<8x1xf32>
    %13 = math.log %12 : vector<8x1xf32>
    %14 = vector.broadcast %13 : vector<8x1xf32> to vector<8x128xf32>
    %15 = arith.subf %9, %14 : vector<8x128xf32>
    %c0_7 = arith.constant 0 : index
    %c0_8 = arith.constant 0 : index
    %16 = vector.load %arg4[%c0_7, %c0_8] : memref<8x128xf32, #tpu.memory_space<vmem>>, vector<8x128xf32>
    tpu.vector_store %arg4[%c0_7, %c0_8], %15 {strides = array<i32>} : memref<8x128xf32, #tpu.memory_space<vmem>>, vector<8x128xf32>,
    return
  }
  func.func @transform_0(%arg0: i32) -> (i32, i32) {
    %c0_i32 = arith.constant 0 : i32
    %c0_i32_0 = arith.constant 0 : i32
    return %arg0, %c0_i32 : i32, i32
  }
  func.func @transform_1(%arg0: i32) -> (i32, i32) {
    %c0_i32 = arith.constant 0 : i32
    %c0_i32_0 = arith.constant 0 : i32
    %c0_i32_1 = arith.constant 0 : i32
    return %c0_i32, %c0_i32_0 : i32, i32
  }
  func.func @transform_2(%arg0: i32) -> (i32, i32) {
    %c0_i32 = arith.constant 0 : i32
    %c0_i32_0 = arith.constant 0 : i32
    %c0_i32_1 = arith.constant 0 : i32
    return %c0_i32, %c0_i32_0 : i32, i32
  }
  func.func @transform_3(%arg0: i32) -> (i32, i32) {
    %c0_i32 = arith.constant 0 : i32
    %c0_i32_0 = arith.constant 0 : i32
    return %arg0, %c0_i32 : i32, i32
  }
}

</mosaic_0001>

<bundles_post_ra>
// kernel: tpu_custom_call.1
= control target key start
LH: loop header
LB: loop body
LE: loop exit
PB: predicated region body
PF: predicated region fallthrough
CT: control target
= control target key end

     0   :  { %v251_v1 = vmov 0.0   ;;  %vm80_vm0 = vcmask 261120   ;;  %vm252_vm1 = vmmov 0   ;;  %s325_s0 = inlined_call_operand.vmem [shape: bf16[8,32], index: 0, kind: input, shape index: {}]   ;;  %s326_s1 = inlined_call_operand.vmem [shape: bf16[128,32], index: 1, kind: input, shape index: {}]   ;;  %s327_s2 = inlined_call_operand.vmem [shape: f32[1,128], index: 2, kind: input, shape index: {}]   ;;  %s328_s3 = inlined_call_operand.hbm [shape: f32[8,128], index: 3, kind: output, shape index: {}]  }
   0x1   :  { %v215_v0 = vld [vmem:[%s326_s1] sm:$0xff]   ;;  %192 = vmatprep.subr.bf16.mxu0 %v251_v1  ;;  %v216_v3 = vld [vmem:[%s326_s1 + $0x8] sm:$0xff]   ;;  %208 = vmatprep.mubr.msk.bf16.mxu0 %vm252_vm1, %v251_v1 }
   0x2   :  { %v85_v2 = vsel %vm80_vm0, %v215_v0, 0  ;;  %v88_v4 = vsel %vm80_vm0, %v216_v3, 0 }
   0x3   :  { %193 = vmatpush3.bf16.xpose.msra.mxu0 %v85_v2 }
   0x4   :  { %194 = vmatprep.subr.bf16.mxu0 %v251_v1 }
   0x5   :  { %8 = vsyncpa [#allocation3], 0  ;;  %v217_v5 = vld [vmem:[%s326_s1 + $0x10] sm:$0xff]   ;;  %v218_v7 = vld [vmem:[%s326_s1 + $0x18] sm:$0xff]  }
   0x6   :  { %v91_v6 = vsel %vm80_vm0, %v217_v5, 0  ;;  %v94_v8 = vsel %vm80_vm0, %v218_v7, 0  ;;  %v219_v9 = vld [vmem:[%s326_s1 + $0x20] sm:$0xff]   ;;  %v220_v11 = vld [vmem:[%s326_s1 + $0x28] sm:$0xff]   ;;  %v221_v13 = vld [vmem:[%s326_s1 + $0x30] sm:$0xff]  }
   0x7   :  { %v97_v10 = vsel %vm80_vm0, %v219_v9, 0  ;;  %v100_v12 = vsel %vm80_vm0, %v220_v11, 0  ;;  %v103_v14 = vsel %vm80_vm0, %v221_v13, 0  ;;  %v222_v15 = vld [vmem:[%s326_s1 + $0x38] sm:$0xff]   ;;  %v16_v17 = vld [vmem:[%s325_s0] sm:$0xf] }
   0x8   :  { %v106_v16 = vsel %vm80_vm0, %v222_v15, 0  ;;  %v173_v18 = vld [vmem:[%s327_s2] ss:$0 sm:$0xff]  ;;  %s253_s0 = smov [#allocation2]  }
   0x9   :  { %s165_s1 = sshll.u32 %s253_s0, 4  ;;  %s166_s1 = int_to_ptr.vmem [resolvable:$true] %s165_s1 }
   0xa   :  { %s227_s2 = scalar_lea.vmem %s166_s1, 128  ;;  %p232_p1 = scmp.lt.s32.totalorder %s166_s1, %s166_s1 }
   0xb   :  { %195 = vmatpush3.bf16.xpose.msra.mxu0 %v88_v4  ;;  %p228_p0 = scmp.ne.s32.totalorder %s166_s1, %s227_s2  ;;  %p233_p2 = scmp.lt.s32.totalorder %s227_s2, %s227_s2 }
   0xc   :  { %196 = vmatprep.subr.bf16.mxu0 %v251_v1 }
   0xd   :  { %p234_p3 = por %p233_p2, %p232_p1 }
   0xf   :  { %p235_p4 = pnand %p234_p3, %p228_p0 }
  0x13   :  { %197 = vmatpush3.bf16.xpose.msra.mxu0 %v91_v6 }
  0x14   :  { %198 = vmatprep.subr.bf16.mxu0 %v251_v1 }
  0x1b   :  { %199 = vmatpush3.bf16.xpose.msra.mxu0 %v94_v8 }
  0x1c   :  { %200 = vmatprep.subr.bf16.mxu0 %v251_v1 }
  0x23   :  { %201 = vmatpush3.bf16.xpose.msra.mxu0 %v97_v10 }
  0x24   :  { %202 = vmatprep.subr.bf16.mxu0 %v251_v1 }
  0x2b   :  { %203 = vmatpush3.bf16.xpose.msra.mxu0 %v100_v12 }
  0x2c   :  { %204 = vmatprep.subr.bf16.mxu0 %v251_v1 }
  0x33   :  { %205 = vmatpush3.bf16.xpose.msra.mxu0 %v103_v14 }
  0x34   :  { %206 = vmatprep.subr.bf16.mxu0 %v251_v1 }
  0x3b   :  { %207 = vmatpush3.bf16.xpose.msra.mxu0 %v106_v16 }
  0x42   :  { %209 = vmatmul.mubr.msk.bf16.vlgmr.msra.gmra.mrb[0].mxu0 %vm80_vm0, %v16_v17 }
 0x115   :  { %v142_v19 = vpop.f32.mrb[0].mxu0 }
 0x116   :  { %v143_v20 = vadd.f32 %v173_v18, %v142_v19  ;;  %v210_v21 = vpop.f32.mrb[1].mxu0 }
 0x117   :  { %v145_v22 = vpop.f32.mrb[2].mxu0 }
 0x118   :  { %148 = vmax.xlane.f32.xlu0 %v143_v20  ;;  %v211_v23 = vpop.f32.mrb[3].mxu0 }
 0x1a5   :  { %v149_v24 = vpop.xlane.xlu0 %148 }
 0x1a6   :  { %v150_v25 = vsub.f32 %v143_v20, %v149_v24 }
 0x1a8   :  { %v151_v26 = vmul.f32 1.442695, %v150_v25 }
 0x1aa   :  { %223 = vpow2.f32 %v151_v26 }
 0x1b4   :  { %v224_v27 = vpop.eup %223 }
 0x1b5   :  { %153 = vadd.xlane.f32.xlu0 %v224_v27 }
 0x242   :  { %v154_v28 = vpop.xlane.xlu0 %153 }
 0x243   :  { %225 = vlog2.f32 %v154_v28 }
 0x24d   :  { %v226_v29 = vpop.eup %225 }
 0x24e   :  { %v156_v30 = vmul.f32 0.6931472, %v226_v29 }
 0x250   :  { %v157_v31 = vsub.f32 %v150_v25, %v156_v30 }
 0x252   :  { %158 = vst [vmem:[#allocation2] sm:$0xff] %v157_v31 }
 0x253   :  { %238 = shalt.err (!%p235_p4)
}
 0x254   :  { %s239_s7 = scalar_lea.hbm %s328_s3, 128 }
 0x255   :  { %p240_p5 = scmp.ne.s32.totalorder %s328_s3, %s239_s7  ;;  %p243_p6 = scmp.lt.u32.totalorder %s239_s7, %s328_s3 }
 0x257   :  { %p245_p7 = pnand %p243_p6, %p240_p5 }
 0x259   :  { %248 = shalt.err (!%p245_p7)
}
 0x25a   :  { %168 = dma.vmem_to_hbm [thread:$0]  %s166_s1, 128, %s328_s3, [#allocation3]  }
 0x25b   :  { %249 = dma.done.wait [#allocation3], 128  }
 0x25c   :  { %250 = vsyncadd [#allocation3], 4294967168 }
 0x25d   :  { %172 = vsyncpa [#allocation3], 1 }

// kernel: tpu_custom_call.1
= control target key start
LH: loop header
LB: loop body
LE: loop exit
PB: predicated region body
PF: predicated region fallthrough
CT: control target
= control target key end

     0   :  { %v251_v1 = vmov 0.0   ;;  %vm80_vm0 = vcmask 261120   ;;  %vm252_vm1 = vmmov 0   ;;  %s325_s0 = inlined_call_operand.vmem [shape: bf16[8,32], index: 0, kind: input, shape index: {}]   ;;  %s326_s1 = inlined_call_operand.vmem [shape: bf16[128,32], index: 1, kind: input, shape index: {}]   ;;  %s327_s2 = inlined_call_operand.vmem [shape: f32[1,128], index: 2, kind: input, shape index: {}]   ;;  %s328_s3 = inlined_call_operand.hbm [shape: f32[8,128], index: 3, kind: output, shape index: {}]  }
   0x1   :  { %v215_v0 = vld [vmem:[%s326_s1] sm:$0xff]   ;;  %192 = vmatprep.subr.bf16.mxu0 %v251_v1  ;;  %v216_v3 = vld [vmem:[%s326_s1 + $0x8] sm:$0xff]   ;;  %208 = vmatprep.mubr.msk.bf16.mxu0 %vm252_vm1, %v251_v1 }
   0x2   :  { %v85_v2 = vsel %vm80_vm0, %v215_v0, 0  ;;  %v88_v4 = vsel %vm80_vm0, %v216_v3, 0 }
   0x3   :  { %193 = vmatpush3.bf16.xpose.msra.mxu0 %v85_v2 }
   0x4   :  { %194 = vmatprep.subr.bf16.mxu0 %v251_v1 }
   0x5   :  { %8 = vsyncpa [#allocation3], 0  ;;  %v217_v5 = vld [vmem:[%s326_s1 + $0x10] sm:$0xff]   ;;  %v218_v7 = vld [vmem:[%s326_s1 + $0x18] sm:$0xff]  }
   0x6   :  { %v91_v6 = vsel %vm80_vm0, %v217_v5, 0  ;;  %v94_v8 = vsel %vm80_vm0, %v218_v7, 0  ;;  %v219_v9 = vld [vmem:[%s326_s1 + $0x20] sm:$0xff]   ;;  %v220_v11 = vld [vmem:[%s326_s1 + $0x28] sm:$0xff]   ;;  %v221_v13 = vld [vmem:[%s326_s1 + $0x30] sm:$0xff]  }
   0x7   :  { %v97_v10 = vsel %vm80_vm0, %v219_v9, 0  ;;  %v100_v12 = vsel %vm80_vm0, %v220_v11, 0  ;;  %v103_v14 = vsel %vm80_vm0, %v221_v13, 0  ;;  %v222_v15 = vld [vmem:[%s326_s1 + $0x38] sm:$0xff]   ;;  %v16_v17 = vld [vmem:[%s325_s0] sm:$0xf] }
   0x8   :  { %v106_v16 = vsel %vm80_vm0, %v222_v15, 0  ;;  %v173_v18 = vld [vmem:[%s327_s2] ss:$0 sm:$0xff]  ;;  %s253_s0 = smov [#allocation2]  }
   0x9   :  { %s165_s1 = sshll.u32 %s253_s0, 4  ;;  %s166_s1 = int_to_ptr.vmem [resolvable:$true] %s165_s1 }
   0xa   :  { %s227_s2 = scalar_lea.vmem %s166_s1, 128  ;;  %p232_p1 = scmp.lt.s32.totalorder %s166_s1, %s166_s1 }
   0xb   :  { %195 = vmatpush3.bf16.xpose.msra.mxu0 %v88_v4  ;;  %p228_p0 = scmp.ne.s32.totalorder %s166_s1, %s227_s2  ;;  %p233_p2 = scmp.lt.s32.totalorder %s227_s2, %s227_s2 }
   0xc   :  { %196 = vmatprep.subr.bf16.mxu0 %v251_v1 }
   0xd   :  { %p234_p3 = por %p233_p2, %p232_p1 }
   0xf   :  { %p235_p4 = pnand %p234_p3, %p228_p0 }
  0x13   :  { %197 = vmatpush3.bf16.xpose.msra.mxu0 %v91_v6 }
  0x14   :  { %198 = vmatprep.subr.bf16.mxu0 %v251_v1 }
  0x1b   :  { %199 = vmatpush3.bf16.xpose.msra.mxu0 %v94_v8 }
  0x1c   :  { %200 = vmatprep.subr.bf16.mxu0 %v251_v1 }
  0x23   :  { %201 = vmatpush3.bf16.xpose.msra.mxu0 %v97_v10 }
  0x24   :  { %202 = vmatprep.subr.bf16.mxu0 %v251_v1 }
  0x2b   :  { %203 = vmatpush3.bf16.xpose.msra.mxu0 %v100_v12 }
  0x2c   :  { %204 = vmatprep.subr.bf16.mxu0 %v251_v1 }
  0x33   :  { %205 = vmatpush3.bf16.xpose.msra.mxu0 %v103_v14 }
  0x34   :  { %206 = vmatprep.subr.bf16.mxu0 %v251_v1 }
  0x3b   :  { %207 = vmatpush3.bf16.xpose.msra.mxu0 %v106_v16 }
  0x42   :  { %209 = vmatmul.mubr.msk.bf16.vlgmr.msra.gmra.mrb[0].mxu0 %vm80_vm0, %v16_v17 }
 0x115   :  { %v142_v19 = vpop.f32.mrb[0].mxu0 }
 0x116   :  { %v143_v20 = vadd.f32 %v173_v18, %v142_v19  ;;  %v210_v21 = vpop.f32.mrb[1].mxu0 }
 0x117   :  { %v145_v22 = vpop.f32.mrb[2].mxu0 }
 0x118   :  { %148 = vmax.xlane.f32.xlu0 %v143_v20  ;;  %v211_v23 = vpop.f32.mrb[3].mxu0 }
 0x1a5   :  { %v149_v24 = vpop.xlane.xlu0 %148 }
 0x1a6   :  { %v150_v25 = vsub.f32 %v143_v20, %v149_v24 }
 0x1a8   :  { %v151_v26 = vmul.f32 1.442695, %v150_v25 }
 0x1aa   :  { %223 = vpow2.f32 %v151_v26 }
 0x1b4   :  { %v224_v27 = vpop.eup %223 }
 0x1b5   :  { %153 = vadd.xlane.f32.xlu0 %v224_v27 }
 0x242   :  { %v154_v28 = vpop.xlane.xlu0 %153 }
 0x243   :  { %225 = vlog2.f32 %v154_v28 }
 0x24d   :  { %v226_v29 = vpop.eup %225 }
 0x24e   :  { %v156_v30 = vmul.f32 0.6931472, %v226_v29 }
 0x250   :  { %v157_v31 = vsub.f32 %v150_v25, %v156_v30 }
 0x252   :  { %158 = vst [vmem:[#allocation2] sm:$0xff] %v157_v31 }
 0x253   :  { %238 = shalt.err (!%p235_p4)
}
 0x254   :  { %s239_s7 = scalar_lea.hbm %s328_s3, 128 }
 0x255   :  { %p240_p5 = scmp.ne.s32.totalorder %s328_s3, %s239_s7  ;;  %p243_p6 = scmp.lt.u32.totalorder %s239_s7, %s328_s3 }
 0x257   :  { %p245_p7 = pnand %p243_p6, %p240_p5 }
 0x259   :  { %248 = shalt.err (!%p245_p7)
}
 0x25a   :  { %168 = dma.vmem_to_hbm [thread:$0]  %s166_s1, 128, %s328_s3, [#allocation3]  }
 0x25b   :  { %249 = dma.done.wait [#allocation3], 128  }
 0x25c   :  { %250 = vsyncadd [#allocation3], 4294967168 }
 0x25d   :  { %172 = vsyncpa [#allocation3], 1 }

</bundles_post_ra>
